<compile_context>
chip_gen: v5e
topology: v5e:2x2
jax: 0.10.0
libtpu: 0.0.40
codegen_flags: <defaults>
</compile_context>

<pallas_src>
import functools

import jax
import jax.numpy as jnp
from jax import lax
from jax.experimental import pallas as pl
from jax.experimental.pallas import tpu as pltpu

EPS = 1e-5


# ----------------------------- in-kernel helpers -----------------------------
def _conv3_same(x, w_ref, compute_dtype):
    """k=3, stride=1, zero-padded ('same') conv on one sample, no bias.

    x:     (Ci, L) float32 lane-dense activations.
    w_ref: (3, Co, Ci) tap-major weights (tap 0 multiplies x[l-1]).
    Returns (Co, L) float32 (MXU accumulates in f32; operands cast to compute_dtype).
    """
    _, L = x.shape
    pos = lax.broadcasted_iota(jnp.int32, (1, L), 1)
    # Shifted views via XLU rolls; mask the wrapped column (== zero padding).
    x_left = jnp.where(pos > 0, pltpu.roll(x, shift=1, axis=1), 0.0)          # x[l-1]
    x_right = jnp.where(pos < L - 1, pltpu.roll(x, shift=L - 1, axis=1), 0.0)  # x[l+1]
    w = w_ref[...]                                     # already compute_dtype
    taps = (x_left, x, x_right)
    y = jnp.dot(w[0], taps[0].astype(compute_dtype),
                preferred_element_type=jnp.float32)
    for k in (1, 2):
        y = y + jnp.dot(w[k], taps[k].astype(compute_dtype),
                        preferred_element_type=jnp.float32)
    return y


def _stats1_kernel(x_ref, w1_ref, s_ref, q_ref, *, compute_dtype):
    """Pass 1: per-sample (sum, sum-of-squares) of conv1(x) for BN1 batch stats."""
    x = x_ref[...].astype(jnp.float32)                 # (C, L)
    y1 = _conv3_same(x, w1_ref, compute_dtype)
    s_ref[...] = jnp.sum(y1, axis=1, keepdims=True)
    q_ref[...] = jnp.sum(y1 * y1, axis=1, keepdims=True)


def _stats2_kernel(x_ref, w1_ref, a1_ref, b1_ref, w2_ref, s_ref, q_ref, *,
                   compute_dtype):
    """Pass 2: recompute conv1 -> BN1 -> ReLU -> conv2; per-sample stats for BN2."""
    x = x_ref[...].astype(jnp.float32)
    y1 = _conv3_same(x, w1_ref, compute_dtype)
    h = jnp.maximum(y1 * a1_ref[...] + b1_ref[...], 0.0)        # folded BN1 + ReLU
    y2 = _conv3_same(h, w2_ref, compute_dtype)
    s_ref[...] = jnp.sum(y2, axis=1, keepdims=True)
    q_ref[...] = jnp.sum(y2 * y2, axis=1, keepdims=True)


def _apply_kernel(x_ref, w1_ref, a1_ref, b1_ref, w2_ref, a2_ref, b2_ref, o_ref, *,
                  compute_dtype):
    """Pass 3: full block with both folded BNs, identity shortcut, final ReLU."""
    x = x_ref[...].astype(jnp.float32)
    y1 = _conv3_same(x, w1_ref, compute_dtype)
    h = jnp.maximum(y1 * a1_ref[...] + b1_ref[...], 0.0)
    y2 = _conv3_same(h, w2_ref, compute_dtype)
    out = jnp.maximum(y2 * a2_ref[...] + b2_ref[...] + x, 0.0)
    o_ref[...] = out.astype(o_ref.dtype)


# --------------------------------- wrapper -----------------------------------
def _vmem_limit_bytes():
    # Size against the actual part (v7x: 64 MiB, v5e/v6e: 128 MiB), leave headroom.
    try:
        cap = int(pltpu.get_tpu_info().vmem_capacity_bytes)
    except Exception:
        cap = 64 << 20
    return int(min(cap * 3 // 4, 96 << 20))


def _bn_affine(sum_, sumsq, count, gamma, beta):
    """Fold training-mode BatchNorm (biased variance) into y*scale + shift."""
    mean = sum_ / count
    var = jnp.maximum(sumsq / count - mean * mean, 0.0)   # clamp single-pass cancellation
    scale = gamma * lax.rsqrt(var + EPS)
    shift = beta - mean * scale
    return scale, shift


@functools.partial(jax.jit, static_argnames=("compute_dtype",))
def basic_block_1d(x, params, *, compute_dtype=jnp.bfloat16):
    n, c, l = x.shape
    count = float(n * l)

    # Tap-major weights (K, Co, Ci); tap 0 pairs with x[l-1]. Cast once for the MXU.
    w1 = jnp.transpose(params["w1"], (2, 0, 1)).astype(compute_dtype)
    w2 = jnp.transpose(params["w2"], (2, 0, 1)).astype(compute_dtype)
    g1, be1 = params["g1"], params["be1"]
    g2, be2 = params["g2"], params["be2"]
    # Conv biases b1/b2 intentionally unused: batch-stat BN cancels them exactly.

    cparams = pltpu.CompilerParams(dimension_semantics=("parallel",),
                                   vmem_limit_bytes=_vmem_limit_bytes())

    grid = (n,)
    x_spec = pl.BlockSpec((None, c, l), lambda i: (i, 0, 0))     # kernel sees (C, L)
    w_spec = pl.BlockSpec((3, c, c), lambda i: (0, 0, 0))
    ch_spec = pl.BlockSpec((c, 1), lambda i: (0, 0))
    st_spec = pl.BlockSpec((None, c, 1), lambda i: (i, 0, 0))
    st_shape = jax.ShapeDtypeStruct((n, c, 1), jnp.float32)

    # --- pass 1: BN1 batch statistics of conv1(x) ---------------------------------
    s1, q1 = pl.pallas_call(
        functools.partial(_stats1_kernel, compute_dtype=compute_dtype),
        grid=grid,
        in_specs=[x_spec, w_spec],
        out_specs=(st_spec, st_spec),
        out_shape=(st_shape, st_shape),
        compiler_params=cparams,
    )(x, w1)
    a1, sh1 = _bn_affine(jnp.sum(s1, axis=0), jnp.sum(q1, axis=0), count, g1, be1)

    # --- pass 2: BN2 batch statistics of conv2(relu(bn1(conv1(x)))) ---------------
    s2, q2 = pl.pallas_call(
        functools.partial(_stats2_kernel, compute_dtype=compute_dtype),
        grid=grid,
        in_specs=[x_spec, w_spec, ch_spec, ch_spec, w_spec],
        out_specs=(st_spec, st_spec),
        out_shape=(st_shape, st_shape),
        compiler_params=cparams,
    )(x, w1, a1, sh1, w2)
    a2, sh2 = _bn_affine(jnp.sum(s2, axis=0), jnp.sum(q2, axis=0), count, g2, be2)

    # --- pass 3: apply both folded BNs, residual add, final ReLU ------------------
    return pl.pallas_call(
        functools.partial(_apply_kernel, compute_dtype=compute_dtype),
        grid=grid,
        in_specs=[x_spec, w_spec, ch_spec, ch_spec, w_spec, ch_spec, ch_spec],
        out_specs=x_spec,
        out_shape=jax.ShapeDtypeStruct((n, c, l), x.dtype),      # activation dtype
        compiler_params=cparams,
    )(x, w1, a1, sh1, w2, a2, sh2)


# ---------------- pure-JAX reference (exact PyTorch semantics) ----------------
def ref_block(x, p):
    def conv(inp, w, b):
        y = lax.conv_general_dilated(inp, w, window_strides=(1,), padding=[(1, 1)],
                                     dimension_numbers=("NCH", "OIH", "NCH"),
                                     precision=lax.Precision.HIGHEST)
        return y + b[None]                    # b: (C, 1) -> (1, C, 1)

    def bn(inp, g, be):
        m = jnp.mean(inp, axis=(0, 2), keepdims=True)
        v = jnp.mean((inp - m) ** 2, axis=(0, 2), keepdims=True)
        return g * (inp - m) / jnp.sqrt(v + EPS) + be

    out = conv(x, p["w1"], p["b1"])
    out = bn(out, p["g1"], p["be1"])
    out = jnp.maximum(out, 0.0)
    out = conv(out, p["w2"], p["b2"])
    out = bn(out, p["g2"], p["be2"])
    return jnp.maximum(out + x, 0.0)


if __name__ == "__main__":
    N, C, L, K = 4, 8, 256, 3            # identity shortcut: in_channels == out_channels
    key = jax.random.PRNGKey(0)
    kx, kw1, kb1, kw2, kb2 = jax.random.split(key, 5)

    bound = 1.0 / (C * K) ** 0.5          # PyTorch Conv1d default uniform fan-in bound
    params = dict(
        w1=jax.random.uniform(kw1, (C, C, K), jnp.float32, -bound, bound),
        b1=jax.random.uniform(kb1, (C, 1), jnp.float32, -bound, bound),
        g1=jnp.ones((C, 1), jnp.float32),
        be1=jnp.zeros((C, 1), jnp.float32),
        w2=jax.random.uniform(kw2, (C, C, K), jnp.float32, -bound, bound),
        b2=jax.random.uniform(kb2, (C, 1), jnp.float32, -bound, bound),
        g2=jnp.ones((C, 1), jnp.float32),
        be2=jnp.zeros((C, 1), jnp.float32),
    )
    x = jax.random.normal(kx, (N, C, L), jnp.float32)

    y_ref = ref_block(x, params)

    # f32 MXU path: tight check (also validates the conv-bias / BN cancellation).
    y_f32 = basic_block_1d(x, params, compute_dtype=jnp.float32)
    jax.block_until_ready(y_f32)
    assert y_f32.shape == (N, C, L) and y_f32.dtype == x.dtype
    err_f32 = float(jnp.max(jnp.abs(y_f32 - y_ref)))
    assert err_f32 < 5e-4, err_f32

    # bf16 MXU operands (default, the fast path on v6e/v7x): loose check.
    y_bf16 = basic_block_1d(x, params)
    jax.block_until_ready(y_bf16)
    err_bf16 = float(jnp.max(jnp.abs(y_bf16 - y_ref)))
    assert err_bf16 < 1e-1, err_bf16

    print("KERNEL_OK")
</pallas_src>

<mosaic_0001>
module attributes {stable_mosaic.version = 11 : i64} {
  func.func @_stats1_kernel(%arg0: i32, %arg1: memref<1x8x256xf32, #tpu.memory_space<vmem>>, %arg2: memref<3x8x8xf32, #tpu.memory_space<vmem>>, %arg3: memref<1x8x1xf32, #tpu.memory_space<vmem>>, %arg4: memref<1x8x1xf32, #tpu.memory_space<vmem>>) attributes {dimension_semantics = [#tpu.dimension_semantics<parallel>], iteration_bounds = array<i64: 4>, scalar_prefetch = 0 : i64, scratch_operands = 0 : i64, tpu.core_type = #tpu.core_type<tc>, window_params = [{transform_indices = @transform_0, window_bounds = array<i64: 1, 8, 256>}, {pipeline_mode = #tpu.pipeline_mode<synchronous>, transform_indices = @transform_1, window_bounds = array<i64: 3, 8, 8>}, {transform_indices = @transform_2, window_bounds = array<i64: 1, 8, 1>}, {transform_indices = @transform_3, window_bounds = array<i64: 1, 8, 1>}]} {
    %c0 = arith.constant 0 : index
    %c0_0 = arith.constant 0 : index
    %c0_1 = arith.constant 0 : index
    %0 = vector.load %arg1[%c0, %c0_0, %c0_1] : memref<1x8x256xf32, #tpu.memory_space<vmem>>, vector<1x8x256xf32>
    %1 = vector.shape_cast %0 : vector<1x8x256xf32> to vector<8x256xf32>
    %2 = tpu.iota {dimensions = array<i32: 1>} : vector<1x256xi32>
    %c0_i32 = arith.constant 0 : i32
    %3 = vector.broadcast %c0_i32 : i32 to vector<1x256xi32>
    %4 = arith.cmpi sgt, %2, %3 : vector<1x256xi32>
    %c1_i32 = arith.constant 1 : i32
    %5 = tpu.dynamic_rotate %1 by %c1_i32 dim 1 : vector<8x256xf32>, i32 -> vector<8x256xf32>
    %cst = arith.constant 0.000000e+00 : f32
    %6 = vector.shape_cast %4 : vector<1x256xi1> to vector<1x256xi1>
    %7 = vector.broadcast %6 : vector<1x256xi1> to vector<8x256xi1>
    %8 = vector.broadcast %cst : f32 to vector<8x256xf32>
    %9 = arith.select %7, %5, %8 : vector<8x256xi1>, vector<8x256xf32>
    %c255_i32 = arith.constant 255 : i32
    %10 = vector.broadcast %c255_i32 : i32 to vector<1x256xi32>
    %11 = arith.cmpi slt, %2, %10 : vector<1x256xi32>
    %c255_i32_2 = arith.constant 255 : i32
    %12 = tpu.dynamic_rotate %1 by %c255_i32_2 dim 1 : vector<8x256xf32>, i32 -> vector<8x256xf32>
    %cst_3 = arith.constant 0.000000e+00 : f32
    %13 = vector.shape_cast %11 : vector<1x256xi1> to vector<1x256xi1>
    %14 = vector.broadcast %13 : vector<1x256xi1> to vector<8x256xi1>
    %15 = vector.broadcast %cst_3 : f32 to vector<8x256xf32>
    %16 = arith.select %14, %12, %15 : vector<8x256xi1>, vector<8x256xf32>
    %c0_4 = arith.constant 0 : index
    %c0_5 = arith.constant 0 : index
    %c0_6 = arith.constant 0 : index
    %17 = vector.load %arg2[%c0_4, %c0_5, %c0_6] : memref<3x8x8xf32, #tpu.memory_space<vmem>>, vector<3x8x8xf32>
    %18 = vector.extract_strided_slice %17 {offsets = [0, 0, 0], sizes = [1, 8, 8], strides = [1, 1, 1]} : vector<3x8x8xf32> to vector<1x8x8xf32>
    %19 = vector.shape_cast %18 : vector<1x8x8xf32> to vector<8x8xf32>
    %cst_7 = arith.constant dense<0.000000e+00> : vector<8x256xf32>
    %20 = tpu.matmul %19, %9, %cst_7 {dimension_numbers = #tpu.dot_dimension_numbers<[1], [0], [0], [1], [0, 0, 1, 1], [], []>} : vector<8x8xf32>, vector<8x256xf32>, vector<8x256xf32> -> vector<8x256xf32>
    %21 = vector.extract_strided_slice %17 {offsets = [1, 0, 0], sizes = [1, 8, 8], strides = [1, 1, 1]} : vector<3x8x8xf32> to vector<1x8x8xf32>
    %22 = vector.shape_cast %21 : vector<1x8x8xf32> to vector<8x8xf32>
    %cst_8 = arith.constant dense<0.000000e+00> : vector<8x256xf32>
    %23 = tpu.matmul %22, %1, %cst_8 {dimension_numbers = #tpu.dot_dimension_numbers<[1], [0], [0], [1], [0, 0, 1, 1], [], []>} : vector<8x8xf32>, vector<8x256xf32>, vector<8x256xf32> -> vector<8x256xf32>
    %24 = arith.addf %20, %23 : vector<8x256xf32>
    %25 = vector.extract_strided_slice %17 {offsets = [2, 0, 0], sizes = [1, 8, 8], strides = [1, 1, 1]} : vector<3x8x8xf32> to vector<1x8x8xf32>
    %26 = vector.shape_cast %25 : vector<1x8x8xf32> to vector<8x8xf32>
    %cst_9 = arith.constant dense<0.000000e+00> : vector<8x256xf32>
    %27 = tpu.matmul %26, %16, %cst_9 {dimension_numbers = #tpu.dot_dimension_numbers<[1], [0], [0], [1], [0, 0, 1, 1], [], []>} : vector<8x8xf32>, vector<8x256xf32>, vector<8x256xf32> -> vector<8x256xf32>
    %28 = arith.addf %24, %27 : vector<8x256xf32>
    %cst_10 = arith.constant dense<0.000000e+00> : vector<8xf32>
    %29 = vector.multi_reduction <add>, %28, %cst_10 [1] : vector<8x256xf32> to vector<8xf32>
    %30 = vector.shape_cast %29 : vector<8xf32> to vector<8x1xf32>
    %c0_11 = arith.constant 0 : index
    %c0_12 = arith.constant 0 : index
    %c0_13 = arith.constant 0 : index
    %31 = vector.load %arg3[%c0_11, %c0_12, %c0_13] : memref<1x8x1xf32, #tpu.memory_space<vmem>>, vector<1x8x1xf32>
    %32 = vector.shape_cast %31 : vector<1x8x1xf32> to vector<8x1xf32>
    %33 = vector.shape_cast %30 : vector<8x1xf32> to vector<1x8x1xf32>
    tpu.vector_store %arg3[%c0_11, %c0_12, %c0_13], %33 {strides = array<i32>} : memref<1x8x1xf32, #tpu.memory_space<vmem>>, vector<1x8x1xf32>,
    %34 = arith.mulf %28, %28 : vector<8x256xf32>
    %cst_14 = arith.constant dense<0.000000e+00> : vector<8xf32>
    %35 = vector.multi_reduction <add>, %34, %cst_14 [1] : vector<8x256xf32> to vector<8xf32>
    %36 = vector.shape_cast %35 : vector<8xf32> to vector<8x1xf32>
    %c0_15 = arith.constant 0 : index
    %c0_16 = arith.constant 0 : index
    %c0_17 = arith.constant 0 : index
    %37 = vector.load %arg4[%c0_15, %c0_16, %c0_17] : memref<1x8x1xf32, #tpu.memory_space<vmem>>, vector<1x8x1xf32>
    %38 = vector.shape_cast %37 : vector<1x8x1xf32> to vector<8x1xf32>
    %39 = vector.shape_cast %36 : vector<8x1xf32> to vector<1x8x1xf32>
    tpu.vector_store %arg4[%c0_15, %c0_16, %c0_17], %39 {strides = array<i32>} : memref<1x8x1xf32, #tpu.memory_space<vmem>>, vector<1x8x1xf32>,
    return
  }
  func.func @transform_0(%arg0: i32) -> (i32, i32, i32) {
    %c0_i32 = arith.constant 0 : i32
    %c0_i32_0 = arith.constant 0 : i32
    %c0_i32_1 = arith.constant 0 : i32
    return %arg0, %c0_i32, %c0_i32_0 : i32, i32, i32
  }
  func.func @transform_1(%arg0: i32) -> (i32, i32, i32) {
    %c0_i32 = arith.constant 0 : i32
    %c0_i32_0 = arith.constant 0 : i32
    %c0_i32_1 = arith.constant 0 : i32
    %c0_i32_2 = arith.constant 0 : i32
    return %c0_i32, %c0_i32_0, %c0_i32_1 : i32, i32, i32
  }
  func.func @transform_2(%arg0: i32) -> (i32, i32, i32) {
    %c0_i32 = arith.constant 0 : i32
    %c0_i32_0 = arith.constant 0 : i32
    %c0_i32_1 = arith.constant 0 : i32
    return %arg0, %c0_i32, %c0_i32_0 : i32, i32, i32
  }
  func.func @transform_3(%arg0: i32) -> (i32, i32, i32) {
    %c0_i32 = arith.constant 0 : i32
    %c0_i32_0 = arith.constant 0 : i32
    %c0_i32_1 = arith.constant 0 : i32
    return %arg0, %c0_i32, %c0_i32_0 : i32, i32, i32
  }
}

module attributes {stable_mosaic.version = 11 : i64} {
  func.func @_stats2_kernel(%arg0: i32, %arg1: memref<1x8x256xf32, #tpu.memory_space<vmem>>, %arg2: memref<3x8x8xf32, #tpu.memory_space<vmem>>, %arg3: memref<8x1xf32, #tpu.memory_space<vmem>>, %arg4: memref<8x1xf32, #tpu.memory_space<vmem>>, %arg5: memref<3x8x8xf32, #tpu.memory_space<vmem>>, %arg6: memref<1x8x1xf32, #tpu.memory_space<vmem>>, %arg7: memref<1x8x1xf32, #tpu.memory_space<vmem>>) attributes {dimension_semantics = [#tpu.dimension_semantics<parallel>], iteration_bounds = array<i64: 4>, scalar_prefetch = 0 : i64, scratch_operands = 0 : i64, tpu.core_type = #tpu.core_type<tc>, window_params = [{transform_indices = @transform_0, window_bounds = array<i64: 1, 8, 256>}, {pipeline_mode = #tpu.pipeline_mode<synchronous>, transform_indices = @transform_1, window_bounds = array<i64: 3, 8, 8>}, {pipeline_mode = #tpu.pipeline_mode<synchronous>, transform_indices = @transform_2, window_bounds = array<i64: 8, 1>}, {pipeline_mode = #tpu.pipeline_mode<synchronous>, transform_indices = @transform_3, window_bounds = array<i64: 8, 1>}, {pipeline_mode = #tpu.pipeline_mode<synchronous>, transform_indices = @transform_4, window_bounds = array<i64: 3, 8, 8>}, {transform_indices = @transform_5, window_bounds = array<i64: 1, 8, 1>}, {transform_indices = @transform_6, window_bounds = array<i64: 1, 8, 1>}]} {
    %c0 = arith.constant 0 : index
    %c0_0 = arith.constant 0 : index
    %c0_1 = arith.constant 0 : index
    %0 = vector.load %arg1[%c0, %c0_0, %c0_1] : memref<1x8x256xf32, #tpu.memory_space<vmem>>, vector<1x8x256xf32>
    %1 = vector.shape_cast %0 : vector<1x8x256xf32> to vector<8x256xf32>
    %2 = tpu.iota {dimensions = array<i32: 1>} : vector<1x256xi32>
    %c0_i32 = arith.constant 0 : i32
    %3 = vector.broadcast %c0_i32 : i32 to vector<1x256xi32>
    %4 = arith.cmpi sgt, %2, %3 : vector<1x256xi32>
    %c1_i32 = arith.constant 1 : i32
    %5 = tpu.dynamic_rotate %1 by %c1_i32 dim 1 : vector<8x256xf32>, i32 -> vector<8x256xf32>
    %cst = arith.constant 0.000000e+00 : f32
    %6 = vector.shape_cast %4 : vector<1x256xi1> to vector<1x256xi1>
    %7 = vector.broadcast %6 : vector<1x256xi1> to vector<8x256xi1>
    %8 = vector.broadcast %cst : f32 to vector<8x256xf32>
    %9 = arith.select %7, %5, %8 : vector<8x256xi1>, vector<8x256xf32>
    %c255_i32 = arith.constant 255 : i32
    %10 = vector.broadcast %c255_i32 : i32 to vector<1x256xi32>
    %11 = arith.cmpi slt, %2, %10 : vector<1x256xi32>
    %c255_i32_2 = arith.constant 255 : i32
    %12 = tpu.dynamic_rotate %1 by %c255_i32_2 dim 1 : vector<8x256xf32>, i32 -> vector<8x256xf32>
    %cst_3 = arith.constant 0.000000e+00 : f32
    %13 = vector.shape_cast %11 : vector<1x256xi1> to vector<1x256xi1>
    %14 = vector.broadcast %13 : vector<1x256xi1> to vector<8x256xi1>
    %15 = vector.broadcast %cst_3 : f32 to vector<8x256xf32>
    %16 = arith.select %14, %12, %15 : vector<8x256xi1>, vector<8x256xf32>
    %c0_4 = arith.constant 0 : index
    %c0_5 = arith.constant 0 : index
    %c0_6 = arith.constant 0 : index
    %17 = vector.load %arg2[%c0_4, %c0_5, %c0_6] : memref<3x8x8xf32, #tpu.memory_space<vmem>>, vector<3x8x8xf32>
    %18 = vector.extract_strided_slice %17 {offsets = [0, 0, 0], sizes = [1, 8, 8], strides = [1, 1, 1]} : vector<3x8x8xf32> to vector<1x8x8xf32>
    %19 = vector.shape_cast %18 : vector<1x8x8xf32> to vector<8x8xf32>
    %cst_7 = arith.constant dense<0.000000e+00> : vector<8x256xf32>
    %20 = tpu.matmul %19, %9, %cst_7 {dimension_numbers = #tpu.dot_dimension_numbers<[1], [0], [0], [1], [0, 0, 1, 1], [], []>} : vector<8x8xf32>, vector<8x256xf32>, vector<8x256xf32> -> vector<8x256xf32>
    %21 = vector.extract_strided_slice %17 {offsets = [1, 0, 0], sizes = [1, 8, 8], strides = [1, 1, 1]} : vector<3x8x8xf32> to vector<1x8x8xf32>
    %22 = vector.shape_cast %21 : vector<1x8x8xf32> to vector<8x8xf32>
    %cst_8 = arith.constant dense<0.000000e+00> : vector<8x256xf32>
    %23 = tpu.matmul %22, %1, %cst_8 {dimension_numbers = #tpu.dot_dimension_numbers<[1], [0], [0], [1], [0, 0, 1, 1], [], []>} : vector<8x8xf32>, vector<8x256xf32>, vector<8x256xf32> -> vector<8x256xf32>
    %24 = arith.addf %20, %23 : vector<8x256xf32>
    %25 = vector.extract_strided_slice %17 {offsets = [2, 0, 0], sizes = [1, 8, 8], strides = [1, 1, 1]} : vector<3x8x8xf32> to vector<1x8x8xf32>
    %26 = vector.shape_cast %25 : vector<1x8x8xf32> to vector<8x8xf32>
    %cst_9 = arith.constant dense<0.000000e+00> : vector<8x256xf32>
    %27 = tpu.matmul %26, %16, %cst_9 {dimension_numbers = #tpu.dot_dimension_numbers<[1], [0], [0], [1], [0, 0, 1, 1], [], []>} : vector<8x8xf32>, vector<8x256xf32>, vector<8x256xf32> -> vector<8x256xf32>
    %28 = arith.addf %24, %27 : vector<8x256xf32>
    %c0_10 = arith.constant 0 : index
    %c0_11 = arith.constant 0 : index
    %29 = vector.load %arg3[%c0_10, %c0_11] : memref<8x1xf32, #tpu.memory_space<vmem>>, vector<8x1xf32>
    %30 = vector.broadcast %29 : vector<8x1xf32> to vector<8x256xf32>
    %31 = arith.mulf %28, %30 : vector<8x256xf32>
    %c0_12 = arith.constant 0 : index
    %c0_13 = arith.constant 0 : index
    %32 = vector.load %arg4[%c0_12, %c0_13] : memref<8x1xf32, #tpu.memory_space<vmem>>, vector<8x1xf32>
    %33 = vector.broadcast %32 : vector<8x1xf32> to vector<8x256xf32>
    %34 = arith.addf %31, %33 : vector<8x256xf32>
    %cst_14 = arith.constant 0.000000e+00 : f32
    %35 = vector.broadcast %cst_14 : f32 to vector<8x256xf32>
    %36 = arith.maximumf %34, %35 : vector<8x256xf32>
    %37 = tpu.iota {dimensions = array<i32: 1>} : vector<1x256xi32>
    %c0_i32_15 = arith.constant 0 : i32
    %38 = vector.broadcast %c0_i32_15 : i32 to vector<1x256xi32>
    %39 = arith.cmpi sgt, %37, %38 : vector<1x256xi32>
    %c1_i32_16 = arith.constant 1 : i32
    %40 = tpu.dynamic_rotate %36 by %c1_i32_16 dim 1 : vector<8x256xf32>, i32 -> vector<8x256xf32>
    %cst_17 = arith.constant 0.000000e+00 : f32
    %41 = vector.shape_cast %39 : vector<1x256xi1> to vector<1x256xi1>
    %42 = vector.broadcast %41 : vector<1x256xi1> to vector<8x256xi1>
    %43 = vector.broadcast %cst_17 : f32 to vector<8x256xf32>
    %44 = arith.select %42, %40, %43 : vector<8x256xi1>, vector<8x256xf32>
    %c255_i32_18 = arith.constant 255 : i32
    %45 = vector.broadcast %c255_i32_18 : i32 to vector<1x256xi32>
    %46 = arith.cmpi slt, %37, %45 : vector<1x256xi32>
    %c255_i32_19 = arith.constant 255 : i32
    %47 = tpu.dynamic_rotate %36 by %c255_i32_19 dim 1 : vector<8x256xf32>, i32 -> vector<8x256xf32>
    %cst_20 = arith.constant 0.000000e+00 : f32
    %48 = vector.shape_cast %46 : vector<1x256xi1> to vector<1x256xi1>
    %49 = vector.broadcast %48 : vector<1x256xi1> to vector<8x256xi1>
    %50 = vector.broadcast %cst_20 : f32 to vector<8x256xf32>
    %51 = arith.select %49, %47, %50 : vector<8x256xi1>, vector<8x256xf32>
    %c0_21 = arith.constant 0 : index
    %c0_22 = arith.constant 0 : index
    %c0_23 = arith.constant 0 : index
    %52 = vector.load %arg5[%c0_21, %c0_22, %c0_23] : memref<3x8x8xf32, #tpu.memory_space<vmem>>, vector<3x8x8xf32>
    %53 = vector.extract_strided_slice %52 {offsets = [0, 0, 0], sizes = [1, 8, 8], strides = [1, 1, 1]} : vector<3x8x8xf32> to vector<1x8x8xf32>
    %54 = vector.shape_cast %53 : vector<1x8x8xf32> to vector<8x8xf32>
    %cst_24 = arith.constant dense<0.000000e+00> : vector<8x256xf32>
    %55 = tpu.matmul %54, %44, %cst_24 {dimension_numbers = #tpu.dot_dimension_numbers<[1], [0], [0], [1], [0, 0, 1, 1], [], []>} : vector<8x8xf32>, vector<8x256xf32>, vector<8x256xf32> -> vector<8x256xf32>
    %56 = vector.extract_strided_slice %52 {offsets = [1, 0, 0], sizes = [1, 8, 8], strides = [1, 1, 1]} : vector<3x8x8xf32> to vector<1x8x8xf32>
    %57 = vector.shape_cast %56 : vector<1x8x8xf32> to vector<8x8xf32>
    %cst_25 = arith.constant dense<0.000000e+00> : vector<8x256xf32>
    %58 = tpu.matmul %57, %36, %cst_25 {dimension_numbers = #tpu.dot_dimension_numbers<[1], [0], [0], [1], [0, 0, 1, 1], [], []>} : vector<8x8xf32>, vector<8x256xf32>, vector<8x256xf32> -> vector<8x256xf32>
    %59 = arith.addf %55, %58 : vector<8x256xf32>
    %60 = vector.extract_strided_slice %52 {offsets = [2, 0, 0], sizes = [1, 8, 8], strides = [1, 1, 1]} : vector<3x8x8xf32> to vector<1x8x8xf32>
    %61 = vector.shape_cast %60 : vector<1x8x8xf32> to vector<8x8xf32>
    %cst_26 = arith.constant dense<0.000000e+00> : vector<8x256xf32>
    %62 = tpu.matmul %61, %51, %cst_26 {dimension_numbers = #tpu.dot_dimension_numbers<[1], [0], [0], [1], [0, 0, 1, 1], [], []>} : vector<8x8xf32>, vector<8x256xf32>, vector<8x256xf32> -> vector<8x256xf32>
    %63 = arith.addf %59, %62 : vector<8x256xf32>
    %cst_27 = arith.constant dense<0.000000e+00> : vector<8xf32>
    %64 = vector.multi_reduction <add>, %63, %cst_27 [1] : vector<8x256xf32> to vector<8xf32>
    %65 = vector.shape_cast %64 : vector<8xf32> to vector<8x1xf32>
    %c0_28 = arith.constant 0 : index
    %c0_29 = arith.constant 0 : index
    %c0_30 = arith.constant 0 : index
    %66 = vector.load %arg6[%c0_28, %c0_29, %c0_30] : memref<1x8x1xf32, #tpu.memory_space<vmem>>, vector<1x8x1xf32>
    %67 = vector.shape_cast %66 : vector<1x8x1xf32> to vector<8x1xf32>
    %68 = vector.shape_cast %65 : vector<8x1xf32> to vector<1x8x1xf32>
    tpu.vector_store %arg6[%c0_28, %c0_29, %c0_30], %68 {strides = array<i32>} : memref<1x8x1xf32, #tpu.memory_space<vmem>>, vector<1x8x1xf32>,
    %69 = arith.mulf %63, %63 : vector<8x256xf32>
    %cst_31 = arith.constant dense<0.000000e+00> : vector<8xf32>
    %70 = vector.multi_reduction <add>, %69, %cst_31 [1] : vector<8x256xf32> to vector<8xf32>
    %71 = vector.shape_cast %70 : vector<8xf32> to vector<8x1xf32>
    %c0_32 = arith.constant 0 : index
    %c0_33 = arith.constant 0 : index
    %c0_34 = arith.constant 0 : index
    %72 = vector.load %arg7[%c0_32, %c0_33, %c0_34] : memref<1x8x1xf32, #tpu.memory_space<vmem>>, vector<1x8x1xf32>
    %73 = vector.shape_cast %72 : vector<1x8x1xf32> to vector<8x1xf32>
    %74 = vector.shape_cast %71 : vector<8x1xf32> to vector<1x8x1xf32>
    tpu.vector_store %arg7[%c0_32, %c0_33, %c0_34], %74 {strides = array<i32>} : memref<1x8x1xf32, #tpu.memory_space<vmem>>, vector<1x8x1xf32>,
    return
  }
  func.func @transform_0(%arg0: i32) -> (i32, i32, i32) {
    %c0_i32 = arith.constant 0 : i32
    %c0_i32_0 = arith.constant 0 : i32
    %c0_i32_1 = arith.constant 0 : i32
    return %arg0, %c0_i32, %c0_i32_0 : i32, i32, i32
  }
  func.func @transform_1(%arg0: i32) -> (i32, i32, i32) {
    %c0_i32 = arith.constant 0 : i32
    %c0_i32_0 = arith.constant 0 : i32
    %c0_i32_1 = arith.constant 0 : i32
    %c0_i32_2 = arith.constant 0 : i32
    return %c0_i32, %c0_i32_0, %c0_i32_1 : i32, i32, i32
  }
  func.func @transform_2(%arg0: i32) -> (i32, i32) {
    %c0_i32 = arith.constant 0 : i32
    %c0_i32_0 = arith.constant 0 : i32
    %c0_i32_1 = arith.constant 0 : i32
    return %c0_i32, %c0_i32_0 : i32, i32
  }
  func.func @transform_3(%arg0: i32) -> (i32, i32) {
    %c0_i32 = arith.constant 0 : i32
    %c0_i32_0 = arith.constant 0 : i32
    %c0_i32_1 = arith.constant 0 : i32
    return %c0_i32, %c0_i32_0 : i32, i32
  }
  func.func @transform_4(%arg0: i32) -> (i32, i32, i32) {
    %c0_i32 = arith.constant 0 : i32
    %c0_i32_0 = arith.constant 0 : i32
    %c0_i32_1 = arith.constant 0 : i32
    %c0_i32_2 = arith.constant 0 : i32
    return %c0_i32, %c0_i32_0, %c0_i32_1 : i32, i32, i32
  }
  func.func @transform_5(%arg0: i32) -> (i32, i32, i32) {
    %c0_i32 = arith.constant 0 : i32
    %c0_i32_0 = arith.constant 0 : i32
    %c0_i32_1 = arith.constant 0 : i32
    return %arg0, %c0_i32, %c0_i32_0 : i32, i32, i32
  }
  func.func @transform_6(%arg0: i32) -> (i32, i32, i32) {
    %c0_i32 = arith.constant 0 : i32
    %c0_i32_0 = arith.constant 0 : i32
    %c0_i32_1 = arith.constant 0 : i32
    return %arg0, %c0_i32, %c0_i32_0 : i32, i32, i32
  }
}

module attributes {stable_mosaic.version = 11 : i64} {
  func.func @_apply_kernel(%arg0: i32, %arg1: memref<1x8x256xf32, #tpu.memory_space<vmem>>, %arg2: memref<3x8x8xf32, #tpu.memory_space<vmem>>, %arg3: memref<8x1xf32, #tpu.memory_space<vmem>>, %arg4: memref<8x1xf32, #tpu.memory_space<vmem>>, %arg5: memref<3x8x8xf32, #tpu.memory_space<vmem>>, %arg6: memref<8x1xf32, #tpu.memory_space<vmem>>, %arg7: memref<8x1xf32, #tpu.memory_space<vmem>>, %arg8: memref<1x8x256xf32, #tpu.memory_space<vmem>>) attributes {dimension_semantics = [#tpu.dimension_semantics<parallel>], iteration_bounds = array<i64: 4>, scalar_prefetch = 0 : i64, scratch_operands = 0 : i64, tpu.core_type = #tpu.core_type<tc>, window_params = [{transform_indices = @transform_0, window_bounds = array<i64: 1, 8, 256>}, {pipeline_mode = #tpu.pipeline_mode<synchronous>, transform_indices = @transform_1, window_bounds = array<i64: 3, 8, 8>}, {pipeline_mode = #tpu.pipeline_mode<synchronous>, transform_indices = @transform_2, window_bounds = array<i64: 8, 1>}, {pipeline_mode = #tpu.pipeline_mode<synchronous>, transform_indices = @transform_3, window_bounds = array<i64: 8, 1>}, {pipeline_mode = #tpu.pipeline_mode<synchronous>, transform_indices = @transform_4, window_bounds = array<i64: 3, 8, 8>}, {pipeline_mode = #tpu.pipeline_mode<synchronous>, transform_indices = @transform_5, window_bounds = array<i64: 8, 1>}, {pipeline_mode = #tpu.pipeline_mode<synchronous>, transform_indices = @transform_6, window_bounds = array<i64: 8, 1>}, {transform_indices = @transform_7, window_bounds = array<i64: 1, 8, 256>}]} {
    %c0 = arith.constant 0 : index
    %c0_0 = arith.constant 0 : index
    %c0_1 = arith.constant 0 : index
    %0 = vector.load %arg1[%c0, %c0_0, %c0_1] : memref<1x8x256xf32, #tpu.memory_space<vmem>>, vector<1x8x256xf32>
    %1 = vector.shape_cast %0 : vector<1x8x256xf32> to vector<8x256xf32>
    %2 = tpu.iota {dimensions = array<i32: 1>} : vector<1x256xi32>
    %c0_i32 = arith.constant 0 : i32
    %3 = vector.broadcast %c0_i32 : i32 to vector<1x256xi32>
    %4 = arith.cmpi sgt, %2, %3 : vector<1x256xi32>
    %c1_i32 = arith.constant 1 : i32
    %5 = tpu.dynamic_rotate %1 by %c1_i32 dim 1 : vector<8x256xf32>, i32 -> vector<8x256xf32>
    %cst = arith.constant 0.000000e+00 : f32
    %6 = vector.shape_cast %4 : vector<1x256xi1> to vector<1x256xi1>
    %7 = vector.broadcast %6 : vector<1x256xi1> to vector<8x256xi1>
    %8 = vector.broadcast %cst : f32 to vector<8x256xf32>
    %9 = arith.select %7, %5, %8 : vector<8x256xi1>, vector<8x256xf32>
    %c255_i32 = arith.constant 255 : i32
    %10 = vector.broadcast %c255_i32 : i32 to vector<1x256xi32>
    %11 = arith.cmpi slt, %2, %10 : vector<1x256xi32>
    %c255_i32_2 = arith.constant 255 : i32
    %12 = tpu.dynamic_rotate %1 by %c255_i32_2 dim 1 : vector<8x256xf32>, i32 -> vector<8x256xf32>
    %cst_3 = arith.constant 0.000000e+00 : f32
    %13 = vector.shape_cast %11 : vector<1x256xi1> to vector<1x256xi1>
    %14 = vector.broadcast %13 : vector<1x256xi1> to vector<8x256xi1>
    %15 = vector.broadcast %cst_3 : f32 to vector<8x256xf32>
    %16 = arith.select %14, %12, %15 : vector<8x256xi1>, vector<8x256xf32>
    %c0_4 = arith.constant 0 : index
    %c0_5 = arith.constant 0 : index
    %c0_6 = arith.constant 0 : index
    %17 = vector.load %arg2[%c0_4, %c0_5, %c0_6] : memref<3x8x8xf32, #tpu.memory_space<vmem>>, vector<3x8x8xf32>
    %18 = vector.extract_strided_slice %17 {offsets = [0, 0, 0], sizes = [1, 8, 8], strides = [1, 1, 1]} : vector<3x8x8xf32> to vector<1x8x8xf32>
    %19 = vector.shape_cast %18 : vector<1x8x8xf32> to vector<8x8xf32>
    %cst_7 = arith.constant dense<0.000000e+00> : vector<8x256xf32>
    %20 = tpu.matmul %19, %9, %cst_7 {dimension_numbers = #tpu.dot_dimension_numbers<[1], [0], [0], [1], [0, 0, 1, 1], [], []>} : vector<8x8xf32>, vector<8x256xf32>, vector<8x256xf32> -> vector<8x256xf32>
    %21 = vector.extract_strided_slice %17 {offsets = [1, 0, 0], sizes = [1, 8, 8], strides = [1, 1, 1]} : vector<3x8x8xf32> to vector<1x8x8xf32>
    %22 = vector.shape_cast %21 : vector<1x8x8xf32> to vector<8x8xf32>
    %cst_8 = arith.constant dense<0.000000e+00> : vector<8x256xf32>
    %23 = tpu.matmul %22, %1, %cst_8 {dimension_numbers = #tpu.dot_dimension_numbers<[1], [0], [0], [1], [0, 0, 1, 1], [], []>} : vector<8x8xf32>, vector<8x256xf32>, vector<8x256xf32> -> vector<8x256xf32>
    %24 = arith.addf %20, %23 : vector<8x256xf32>
    %25 = vector.extract_strided_slice %17 {offsets = [2, 0, 0], sizes = [1, 8, 8], strides = [1, 1, 1]} : vector<3x8x8xf32> to vector<1x8x8xf32>
    %26 = vector.shape_cast %25 : vector<1x8x8xf32> to vector<8x8xf32>
    %cst_9 = arith.constant dense<0.000000e+00> : vector<8x256xf32>
    %27 = tpu.matmul %26, %16, %cst_9 {dimension_numbers = #tpu.dot_dimension_numbers<[1], [0], [0], [1], [0, 0, 1, 1], [], []>} : vector<8x8xf32>, vector<8x256xf32>, vector<8x256xf32> -> vector<8x256xf32>
    %28 = arith.addf %24, %27 : vector<8x256xf32>
    %c0_10 = arith.constant 0 : index
    %c0_11 = arith.constant 0 : index
    %29 = vector.load %arg3[%c0_10, %c0_11] : memref<8x1xf32, #tpu.memory_space<vmem>>, vector<8x1xf32>
    %30 = vector.broadcast %29 : vector<8x1xf32> to vector<8x256xf32>
    %31 = arith.mulf %28, %30 : vector<8x256xf32>
    %c0_12 = arith.constant 0 : index
    %c0_13 = arith.constant 0 : index
    %32 = vector.load %arg4[%c0_12, %c0_13] : memref<8x1xf32, #tpu.memory_space<vmem>>, vector<8x1xf32>
    %33 = vector.broadcast %32 : vector<8x1xf32> to vector<8x256xf32>
    %34 = arith.addf %31, %33 : vector<8x256xf32>
    %cst_14 = arith.constant 0.000000e+00 : f32
    %35 = vector.broadcast %cst_14 : f32 to vector<8x256xf32>
    %36 = arith.maximumf %34, %35 : vector<8x256xf32>
    %37 = tpu.iota {dimensions = array<i32: 1>} : vector<1x256xi32>
    %c0_i32_15 = arith.constant 0 : i32
    %38 = vector.broadcast %c0_i32_15 : i32 to vector<1x256xi32>
    %39 = arith.cmpi sgt, %37, %38 : vector<1x256xi32>
    %c1_i32_16 = arith.constant 1 : i32
    %40 = tpu.dynamic_rotate %36 by %c1_i32_16 dim 1 : vector<8x256xf32>, i32 -> vector<8x256xf32>
    %cst_17 = arith.constant 0.000000e+00 : f32
    %41 = vector.shape_cast %39 : vector<1x256xi1> to vector<1x256xi1>
    %42 = vector.broadcast %41 : vector<1x256xi1> to vector<8x256xi1>
    %43 = vector.broadcast %cst_17 : f32 to vector<8x256xf32>
    %44 = arith.select %42, %40, %43 : vector<8x256xi1>, vector<8x256xf32>
    %c255_i32_18 = arith.constant 255 : i32
    %45 = vector.broadcast %c255_i32_18 : i32 to vector<1x256xi32>
    %46 = arith.cmpi slt, %37, %45 : vector<1x256xi32>
    %c255_i32_19 = arith.constant 255 : i32
    %47 = tpu.dynamic_rotate %36 by %c255_i32_19 dim 1 : vector<8x256xf32>, i32 -> vector<8x256xf32>
    %cst_20 = arith.constant 0.000000e+00 : f32
    %48 = vector.shape_cast %46 : vector<1x256xi1> to vector<1x256xi1>
    %49 = vector.broadcast %48 : vector<1x256xi1> to vector<8x256xi1>
    %50 = vector.broadcast %cst_20 : f32 to vector<8x256xf32>
    %51 = arith.select %49, %47, %50 : vector<8x256xi1>, vector<8x256xf32>
    %c0_21 = arith.constant 0 : index
    %c0_22 = arith.constant 0 : index
    %c0_23 = arith.constant 0 : index
    %52 = vector.load %arg5[%c0_21, %c0_22, %c0_23] : memref<3x8x8xf32, #tpu.memory_space<vmem>>, vector<3x8x8xf32>
    %53 = vector.extract_strided_slice %52 {offsets = [0, 0, 0], sizes = [1, 8, 8], strides = [1, 1, 1]} : vector<3x8x8xf32> to vector<1x8x8xf32>
    %54 = vector.shape_cast %53 : vector<1x8x8xf32> to vector<8x8xf32>
    %cst_24 = arith.constant dense<0.000000e+00> : vector<8x256xf32>
    %55 = tpu.matmul %54, %44, %cst_24 {dimension_numbers = #tpu.dot_dimension_numbers<[1], [0], [0], [1], [0, 0, 1, 1], [], []>} : vector<8x8xf32>, vector<8x256xf32>, vector<8x256xf32> -> vector<8x256xf32>
    %56 = vector.extract_strided_slice %52 {offsets = [1, 0, 0], sizes = [1, 8, 8], strides = [1, 1, 1]} : vector<3x8x8xf32> to vector<1x8x8xf32>
    %57 = vector.shape_cast %56 : vector<1x8x8xf32> to vector<8x8xf32>
    %cst_25 = arith.constant dense<0.000000e+00> : vector<8x256xf32>
    %58 = tpu.matmul %57, %36, %cst_25 {dimension_numbers = #tpu.dot_dimension_numbers<[1], [0], [0], [1], [0, 0, 1, 1], [], []>} : vector<8x8xf32>, vector<8x256xf32>, vector<8x256xf32> -> vector<8x256xf32>
    %59 = arith.addf %55, %58 : vector<8x256xf32>
    %60 = vector.extract_strided_slice %52 {offsets = [2, 0, 0], sizes = [1, 8, 8], strides = [1, 1, 1]} : vector<3x8x8xf32> to vector<1x8x8xf32>
    %61 = vector.shape_cast %60 : vector<1x8x8xf32> to vector<8x8xf32>
    %cst_26 = arith.constant dense<0.000000e+00> : vector<8x256xf32>
    %62 = tpu.matmul %61, %51, %cst_26 {dimension_numbers = #tpu.dot_dimension_numbers<[1], [0], [0], [1], [0, 0, 1, 1], [], []>} : vector<8x8xf32>, vector<8x256xf32>, vector<8x256xf32> -> vector<8x256xf32>
    %63 = arith.addf %59, %62 : vector<8x256xf32>
    %c0_27 = arith.constant 0 : index
    %c0_28 = arith.constant 0 : index
    %64 = vector.load %arg6[%c0_27, %c0_28] : memref<8x1xf32, #tpu.memory_space<vmem>>, vector<8x1xf32>
    %65 = vector.broadcast %64 : vector<8x1xf32> to vector<8x256xf32>
    %66 = arith.mulf %63, %65 : vector<8x256xf32>
    %c0_29 = arith.constant 0 : index
    %c0_30 = arith.constant 0 : index
    %67 = vector.load %arg7[%c0_29, %c0_30] : memref<8x1xf32, #tpu.memory_space<vmem>>, vector<8x1xf32>
    %68 = vector.broadcast %67 : vector<8x1xf32> to vector<8x256xf32>
    %69 = arith.addf %66, %68 : vector<8x256xf32>
    %70 = arith.addf %69, %1 : vector<8x256xf32>
    %cst_31 = arith.constant 0.000000e+00 : f32
    %71 = vector.broadcast %cst_31 : f32 to vector<8x256xf32>
    %72 = arith.maximumf %70, %71 : vector<8x256xf32>
    %c0_32 = arith.constant 0 : index
    %c0_33 = arith.constant 0 : index
    %c0_34 = arith.constant 0 : index
    %73 = vector.load %arg8[%c0_32, %c0_33, %c0_34] : memref<1x8x256xf32, #tpu.memory_space<vmem>>, vector<1x8x256xf32>
    %74 = vector.shape_cast %73 : vector<1x8x256xf32> to vector<8x256xf32>
    %75 = vector.shape_cast %72 : vector<8x256xf32> to vector<1x8x256xf32>
    tpu.vector_store %arg8[%c0_32, %c0_33, %c0_34], %75 {strides = array<i32>} : memref<1x8x256xf32, #tpu.memory_space<vmem>>, vector<1x8x256xf32>,
    return
  }
  func.func @transform_0(%arg0: i32) -> (i32, i32, i32) {
    %c0_i32 = arith.constant 0 : i32
    %c0_i32_0 = arith.constant 0 : i32
    %c0_i32_1 = arith.constant 0 : i32
    return %arg0, %c0_i32, %c0_i32_0 : i32, i32, i32
  }
  func.func @transform_1(%arg0: i32) -> (i32, i32, i32) {
    %c0_i32 = arith.constant 0 : i32
    %c0_i32_0 = arith.constant 0 : i32
    %c0_i32_1 = arith.constant 0 : i32
    %c0_i32_2 = arith.constant 0 : i32
    return %c0_i32, %c0_i32_0, %c0_i32_1 : i32, i32, i32
  }
  func.func @transform_2(%arg0: i32) -> (i32, i32) {
    %c0_i32 = arith.constant 0 : i32
    %c0_i32_0 = arith.constant 0 : i32
    %c0_i32_1 = arith.constant 0 : i32
    return %c0_i32, %c0_i32_0 : i32, i32
  }
  func.func @transform_3(%arg0: i32) -> (i32, i32) {
    %c0_i32 = arith.constant 0 : i32
    %c0_i32_0 = arith.constant 0 : i32
    %c0_i32_1 = arith.constant 0 : i32
    return %c0_i32, %c0_i32_0 : i32, i32
  }
  func.func @transform_4(%arg0: i32) -> (i32, i32, i32) {
    %c0_i32 = arith.constant 0 : i32
    %c0_i32_0 = arith.constant 0 : i32
    %c0_i32_1 = arith.constant 0 : i32
    %c0_i32_2 = arith.constant 0 : i32
    return %c0_i32, %c0_i32_0, %c0_i32_1 : i32, i32, i32
  }
  func.func @transform_5(%arg0: i32) -> (i32, i32) {
    %c0_i32 = arith.constant 0 : i32
    %c0_i32_0 = arith.constant 0 : i32
    %c0_i32_1 = arith.constant 0 : i32
    return %c0_i32, %c0_i32_0 : i32, i32
  }
  func.func @transform_6(%arg0: i32) -> (i32, i32) {
    %c0_i32 = arith.constant 0 : i32
    %c0_i32_0 = arith.constant 0 : i32
    %c0_i32_1 = arith.constant 0 : i32
    return %c0_i32, %c0_i32_0 : i32, i32
  }
  func.func @transform_7(%arg0: i32) -> (i32, i32, i32) {
    %c0_i32 = arith.constant 0 : i32
    %c0_i32_0 = arith.constant 0 : i32
    %c0_i32_1 = arith.constant 0 : i32
    return %arg0, %c0_i32, %c0_i32_0 : i32, i32, i32
  }
}

</mosaic_0001>

<bundles_post_ra>
// kernel: basic_block_1d.4
= control target key start
LH: loop header
LB: loop body
LE: loop exit
PB: predicated region body
PF: predicated region fallthrough
CT: control target
= control target key end

     0   :  { %s781_s21 = smov 0   ;;  %s877_s0 = inlined_call_operand.vmem [shape: f32[4,8,256], index: 0, kind: input, shape index: {}]   ;;  %s878_s1 = inlined_call_operand.vmem [shape: f32[3,8,8], index: 1, kind: input, shape index: {}]   ;;  %s879_s2 = inlined_call_operand.vmem [shape: f32[8,1], index: 2, kind: input, shape index: {}]   ;;  %s880_s3 = inlined_call_operand.vmem [shape: f32[8,1], index: 3, kind: input, shape index: {}]   ;;  %s881_s4 = inlined_call_operand.vmem [shape: f32[3,8,8], index: 4, kind: input, shape index: {}]   ;;  %s882_s5 = inlined_call_operand.vmem [shape: f32[4,8,1], index: 5, kind: output, shape index: {0}]   ;;  %s883_s6 = inlined_call_operand.vmem [shape: f32[4,8,1], index: 6, kind: output, shape index: {1}]  }
   0x1 LB: > { %s694_s22 = sadd.s32 4294967295, %s741_s21   ;;  %p698_p0 = scmp.ge.s32.totalorder %s741_s21, 1  ;;  %s741_s21 = sphi %s781_s21, %s17_s21  }
   0x2   : > { %p215_p1 = scmp.lt.s32.totalorder %s741_s21, 5 }
   0x4   : > { %p216_p2 = pnand %p698_p0, %p215_p1 }
   0x5   : > { %p248_p3 = scmp.lt.s32.totalorder (!%p216_p2), %s694_s22, 3  ;;  %s743_s27 = smov (!%p216_p2), 127  }
   0x6   : > { %219 = sbr.rel (%p216_p2) target bundleno = 660 (0x294), region = 40  ;;  %s744_s28 = smov (!%p216_p2), 1  }
   0xb   : > { %s885_s22 = smov (!%p248_p3, %s694_s22), 3  ;;  %v297_v2 = vld [vmem:[%s878_s1 + $0x8] sm:$0xff]  ;;  %vm299_vm0 = vcmask 64512   ;;  %v431_v3 = vld [vmem:[%s879_s2] sm:$0xff]  ;;  %v745_v4 = vmov 0   ;;  %v263_v6 = vlaneseq  ;;  %v298_v18 = vld [vmem:[%s878_s1 + $0x10] sm:$0xff] }
   0xc   : > { %s721_s23 = sshll.u32 %s885_s22, 4  ;;  %733 = vset.pattern.permute.xlu2 %v745_v4  ;;  %734 = vset.pattern.permute.xlu0 %v745_v4  ;;  %v439_v5 = vld [vmem:[%s880_s3] sm:$0xff]  ;;  %v466_v37 = vld [vmem:[%s881_s4 + $0x8] sm:$0xff]  ;;  %v467_v40 = vld [vmem:[%s881_s4 + $0x10] sm:$0xff]  ;;  %vm602_vm5 = vcmask 7168  }
   0xd   : > { %s252_s26 = scalar_lea.vmem %s877_s0, %s721_s23  ;;  %434 = vperm.xlu2 %733, %v431_v3   ;;  %v810_v9 = vand.u32 127, %v263_v6  ;;  %v296_v17 = vld [vmem:[%s878_s1] sm:$0xff]  ;;  %s701_s23 = sshll.u32 %s885_s22, 3 }
   0xe   : > { %v261_v0 = vld [vmem:[%s252_s26] sm:$0xff]  ;;  %v262_v1 = vld [vmem:[%s252_s26 + $0x8] sm:$0xff]  ;;  %s256_s26 = scalar_lea.vmem %s882_s5, %s701_s23  ;;  %s260_s29 = scalar_lea.vmem %s883_s6, %s701_s23 }
   0xf   : > { %283 = vrot.lane.b32.xlu1 %v261_v0, %s743_s27  ;;  %268 = vrot.lane.b32.xlu0 %v261_v0, %s744_s28  ;;  %v265_v10 = vadd.s32 128, %v810_v9  ;;  %vm272_vm1 = vcmp.lt.s32.totalorder %v810_v9, 1  ;;  %vm287_vm2 = vcmp.lt.s32.totalorder %v810_v9, 127  ;;  %vm266_vm3 = vcmp.gt.s32.totalorder %v810_v9, 0  ;;  %v465_v45 = vld [vmem:[%s881_s4] sm:$0xff] }
  0x10   : > { %318 = vmatpush.msra.mxu0 %v261_v0  ;;  %338 = vmatpush.msra.mxu1 %v262_v1 }
  0x11   : > { %703 = vmatmul.msk.f32.vlgmr.msra.gmra.mxu0 %vm299_vm0, %v297_v2  ;;  %704 = vmatmul.msk.f32.vlgmr.msra.gmra.mxu1 %vm299_vm0, %v297_v2  ;;  %vm282_vm4 = vcmp.lt.s32.totalorder %v265_v10, 255 }
  0x15   : > { %442 = vperm.xlu2 %733, %v439_v5  }
  0x17   : > { %285 = vrot.lane.b32.xlu1 %v262_v1, %s743_s27  ;;  %270 = vrot.lane.b32.xlu0 %v262_v1, %s744_s28 }
  0x67   : > { %v435_v21 = vpop.permute.xlu2 %434 }
  0x6f   : > { %v443_v32 = vpop.permute.xlu2 %442 }
  0x81   : > { %v284_v7 = vpop.permute.xlu1 %283  ;;  %v269_v8 = vpop.permute.xlu0 %268 }
  0x89   : > { %v286_v11 = vpop.permute.xlu1 %285  ;;  %v271_v12 = vpop.permute.xlu0 %270 }
  0x8a   : > { %v274_v13 = vsel %vm272_vm1, %v271_v12, %v269_v8  ;;  %v273_v14 = vsel %vm272_vm1, %v269_v8, %v271_v12  ;;  %v288_v15 = vsel %vm287_vm2, %v284_v7, %v286_v11  ;;  %v289_v16 = vsel %vm287_vm2, %v286_v11, %v284_v7 }
  0x8b   : > { %705 = vmatpush.msk.msra.mxu2 %vm266_vm3, %v274_v13  ;;  %381 = vmatpush.msra.mxu3 %v273_v14 }
  0x8c   : > { %404 = vmatpush.msrb.mxu0 %v288_v15  ;;  %709 = vmatpush.msk.msrb.mxu1 %vm282_vm4, %v289_v16 }
  0x8d   : > { %706 = vmatmul.msk.f32.vlgmr.msra.gmra.mxu2 %vm299_vm0, %v296_v17  ;;  %707 = vmatmul.msk.f32.vlgmr.msra.gmra.mxu3 %vm299_vm0, %v296_v17 }
  0x8e   : > { %708 = vmatmul.msk.f32.vlgmr.msrb.gmra.mxu0 %vm299_vm0, %v298_v18  ;;  %710 = vmatmul.msk.f32.vlgmr.msrb.gmra.mxu1 %vm299_vm0, %v298_v18  ;;  %v320_v19 = vpop.f32.mrf.mxu0  ;;  %v340_v20 = vpop.f32.mrf.mxu1 }
 0x10b   : > { %v406_v22 = vpop.f32.mrf.mxu0  ;;  %v426_v23 = vpop.f32.mrf.mxu1 }
 0x110   : > { %v363_v24 = vpop.f32.mrf.mxu2  ;;  %v383_v25 = vpop.f32.mrf.mxu3 }
 0x111   : > { %v364_v26 = vadd.f32 %v363_v24, %v320_v19  ;;  %v384_v27 = vadd.f32 %v383_v25, %v340_v20 }
 0x113   : > { %v429_v28 = vadd.f32 %v406_v22, %v364_v26  ;;  %v430_v29 = vadd.f32 %v426_v23, %v384_v27 }
 0x115   : > { %v437_v30 = vmul.f32 %v435_v21, %v429_v28  ;;  %v438_v31 = vmul.f32 %v435_v21, %v430_v29 }
 0x117   : > { %v446_v33 = vadd.f32 %v443_v32, %v438_v31  ;;  %v445_v34 = vadd.f32 %v443_v32, %v437_v30 }
 0x119   : > { %v448_v35 = vmax.f32 %v446_v33, 0.0  ;;  %v447_v36 = vmax.f32 %v445_v34, 0.0 }
 0x11b   : > { %459 = vrot.lane.b32.xlu1 %v448_v35, %s743_s27  ;;  %506 = vmatpush.msrb.mxu3 %v448_v35 }
 0x11c   : > { %449 = vrot.lane.b32.xlu2 %v447_v36, %s744_s28  ;;  %457 = vrot.lane.b32.xlu0 %v447_v36, %s743_s27 }
 0x11d   : > { %486 = vmatpush.msrb.mxu2 %v447_v36  ;;  %712 = vmatmul.msk.f32.vlgmr.msrb.gmra.mxu3 %vm299_vm0, %v466_v37 }
 0x11e   : > { %711 = vmatmul.msk.f32.vlgmr.msrb.gmra.mxu2 %vm299_vm0, %v466_v37 }
 0x124   : > { %451 = vrot.lane.b32.xlu0 %v448_v35, %s744_s28 }
 0x176   : > { %v450_v43 = vpop.permute.xlu2 %449 }
 0x18d   : > { %v460_v38 = vpop.permute.xlu1 %459 }
 0x18e   : > { %v458_v39 = vpop.permute.xlu0 %457 }
 0x18f   : > { %v461_v41 = vsel %vm287_vm2, %v458_v39, %v460_v38  ;;  %v462_v42 = vsel %vm287_vm2, %v460_v38, %v458_v39 }
 0x190   : > { %572 = vmatpush.msra.mxu2 %v461_v41  ;;  %717 = vmatpush.msk.msra.mxu3 %vm282_vm4, %v462_v42 }
 0x191   : > { %718 = vmatmul.msk.f32.vlgmr.msra.gmra.mxu3 %vm299_vm0, %v467_v40  ;;  %716 = vmatmul.msk.f32.vlgmr.msra.gmra.mxu2 %vm299_vm0, %v467_v40 }
 0x196   : > { %v452_v44 = vpop.permute.xlu0 %451 }
 0x197   : > { %v453_v46 = vsel %vm272_vm1, %v450_v43, %v452_v44  ;;  %v454_v47 = vsel %vm272_vm1, %v452_v44, %v450_v43 }
 0x198   : > { %713 = vmatpush.msk.msra.mxu0 %vm266_vm3, %v454_v47  ;;  %549 = vmatpush.msra.mxu1 %v453_v46 }
 0x199   : > { %714 = vmatmul.msk.f32.vlgmr.msra.gmra.mxu0 %vm299_vm0, %v465_v45  ;;  %715 = vmatmul.msk.f32.vlgmr.msra.gmra.mxu1 %vm299_vm0, %v465_v45 }
 0x1a0   : > { %v508_v49 = vpop.f32.mrf.mxu3 }
 0x1a1   : > { %v488_v48 = vpop.f32.mrf.mxu2 }
 0x214   : > { %v574_v50 = vpop.f32.mrf.mxu2  ;;  %v594_v51 = vpop.f32.mrf.mxu3 }
 0x216   : > { %v531_v52 = vpop.f32.mrf.mxu0  ;;  %v551_v53 = vpop.f32.mrf.mxu1 }
 0x217   : > { %v532_v54 = vadd.f32 %v531_v52, %v488_v48  ;;  %v552_v55 = vadd.f32 %v551_v53, %v508_v49 }
 0x219   : > { %v597_v56 = vadd.f32 %v574_v50, %v532_v54  ;;  %v598_v57 = vadd.f32 %v594_v51, %v552_v55 }
 0x21b   : > { %v604_v58 = vmul.f32 %v597_v56, %v597_v56  ;;  %v605_v59 = vmul.f32 %v598_v57, %v598_v57  ;;  %v599_v60 = vadd.f32 %v598_v57, %v597_v56 }
 0x21d   : > { %600 = vadd.xlane.f32.xlu1 %v599_v60  ;;  %v606_v61 = vadd.f32 %v605_v59, %v604_v58 }
 0x21f   : > { %607 = vadd.xlane.f32.xlu2 %v606_v61 }
 0x290   : > { %v601_v62 = vpop.xlane.xlu1 %600 }
 0x291   : > { %603 = vst.msk [vmem:[%s256_s26] sm:$0xff] %vm602_vm5, %v601_v62 }
 0x292   : > { %v608_v63 = vpop.xlane.xlu2 %607 }
 0x293   : > { %609 = vst.msk [vmem:[%s260_s29] sm:$0xff] %vm602_vm5, %v608_v63 }
 0x294 PF: > { %s17_s21 = sadd.s32 1, %s741_s21  }
 0x295   : > { %p14_p4 = scmp.ge.s32.totalorder %s17_s21, 6  }
 0x297   :  { %16 = sbr.rel (!%p14_p4) target bundleno = 1 (0x1), region = 82 }

// kernel: basic_block_1d.3
= control target key start
LH: loop header
LB: loop body
LE: loop exit
PB: predicated region body
PF: predicated region fallthrough
CT: control target
= control target key end

     0   :  { %9 = vsyncpa [#allocation3], 0  ;;  %s818_s0 = inlined_call_operand.hbm [shape: f32[4,8,256], index: 0, kind: input, shape index: {}]   ;;  %s819_s1 = inlined_call_operand.hbm [shape: f32[3,8,8], index: 1, kind: input, shape index: {}]   ;;  %s820_s2 = inlined_call_operand.vmem [shape: f32[4,8,1], index: 2, kind: output, shape index: {0}]   ;;  %s821_s3 = inlined_call_operand.vmem [shape: f32[4,8,1], index: 3, kind: output, shape index: {1}]  }
   0x1   :  { %11 = vsyncpa [#allocation3 + $0x1], 0 }
   0x2   :  { %12 = vsyncpa [#allocation5], 0  ;;  %s706_s12 = smov 0   ;;  %s708_s13 = smov 0  }
   0x3   :  { %s710_s14 = smov 0   ;;  %s712_s15 = smov 0  }
   0x4 LB: > { %s133_s18 = sshll.u32 %s819_s1, 4  ;;  %s728_s19 = sadd.s32 4294967295, %s679_s15   ;;  %s679_s15 = sphi %s712_s15, %s828_s15   ;;  %s675_s14 = sphi %s710_s14, %s827_s14   ;;  %s671_s13 = sphi %s708_s13, %s826_s13   ;;  %s667_s12 = sphi %s706_s12, %s825_s12   ;;  %s134_s18 = int_to_ptr.hbm [resolvable:$true] %s133_s18 }
   0x5   : > { %p505_p0 = scmp.ge.s32.totalorder %s679_s15, 1  ;;  %p39_p1 = scmp.eq.s32.totalorder %s728_s19, 0 }
   0x6   : > { %p122_p2 = scmp.lt.s32.totalorder %s679_s15, 5  ;;  %s681_s21 = smov [#allocation4]  }
   0x7   : > { %s135_s22 = sshll.u32 %s681_s21, 4  ;;  %s682_s23 = smov 128   ;;  %s136_s22 = int_to_ptr.vmem [resolvable:$true] %s135_s22 }
   0x8   : > { %p733_p3 = pnand %p505_p0, %p122_p2  ;;  %s683_s24 = smov 8  }
   0x9   : > { %s742_s25 = sadd.s32 1, %s679_s15   ;;  %s25_s27 = sadd.s32 1, %s675_s14 }
   0xa   : > { %p533_p4 = pneg %p733_p3  ;;  %s22_s26 = ssub.s32 %s679_s15, %s742_s25 }
   0xb   : > { %p23_p6 = scmp.eq.s32.totalorder %s22_s26, 0  ;;  %p32_p7 = scmp.ne.s32.totalorder %s675_s14, %s671_s13 }
   0xc   : > { %p534_p5 = pnand %p533_p4, %p39_p1  ;;  %p33_p8 = scmp.eq.s32.totalorder %s679_s15, 0 }
   0xd   : > { %p38_p9 = scmp.ne.s32.totalorder %s671_s13, %s667_s12  ;;  %p542_p12 = scmp.lt.s32.totalorder %s679_s15, 4 }
   0xe   : > { %536 = dma.hbm_to_vmem [thread:$0]  (!%p534_p5), %s134_s18, 384, %s136_s22, [#allocation5], %s682_s23, %s682_s23, %s683_s24  }
   0xf   : > { %s752_s28 = scalar_select %p23_p6, %s675_s14, %s25_s27  }
  0x10   : > { %p34_p10 = por %p33_p8, %p32_p7  ;;  %p756_p11 = por %p39_p1, %p38_p9 }
  0x11   : > { %s149_s30 = sand.u32 1, %s675_s14   ;;  %s526_s5 = sshll.u32 %s679_s15, 4 }
  0x12   : > { %s508_s4 = sshll.u32 %s149_s30, 4  ;;  %s158_s8 = scalar_lea.hbm %s818_s0, %s526_s5 }
  0x13   : > { %s153_s9 = scalar_lea.vmem [#allocation2], %s508_s4  ;;  %s160_s11 = sshll.u32 %s158_s8, 4  ;;  %s161_s11 = int_to_ptr.hbm [resolvable:$true] %s160_s11 }
  0x14   : > { %s162_s10 = sshll.u32 %s153_s9, 4  ;;  %p766_p13 = pnand %p542_p12, %p34_p10  ;;  %s163_s10 = int_to_ptr.vmem [resolvable:$true] %s162_s10 }
  0x15   : > { %s150_s16 = scalar_lea.sflag [#allocation3], %s149_s30  ;;  %s611_s17 = sshra.s32 %s161_s11, 4  ;;  %s612_s17 = int_to_ptr.hbm [resolvable:$true] %s611_s17 }
  0x16   : > { %s613_s18 = scalar_lea.hbm %s612_s17, 16  ;;  %p615_p2 = pneg %p766_p13 }
  0x17   : > { %p614_p0 = scmp.ne.s32.totalorder %s612_s17, %s613_s18  ;;  %s618_s22 = scalar_lea.hbm %s818_s0, 64 }
  0x18   : > { %p619_p6 = scmp.lt.s32.totalorder %s612_s17, %s818_s0  ;;  %p620_p7 = scmp.lt.s32.totalorder %s618_s22, %s613_s18 }
  0x19   : > { %p616_p4 = pnand %p615_p2, %p614_p0 }
  0x1a   : > { %p621_p8 = por %p620_p7, %p619_p6 }
  0x1b   : > { %p617_p5 = pneg %p616_p4 }
  0x1d   : > { %p622_p9 = pnand %p621_p8, %p617_p5 }
  0x1f   : > { %625 = shalt.err (!%p622_p9)
}
  0x20   : > { %540 = dma.hbm_to_vmem [thread:$0]  (!%p766_p13), %s161_s11, 256, %s163_s10, %s150_s16  }
  0x21   : > { %171 = sbr.rel (%p733_p3) target bundleno = 431 (0x1af), region = 28  ;;  %s173_s26 = sand.u32 (!%p733_p3), 1, %s671_s13  }
  0x22   : > { %s512_s27 = sshll.u32 (!%p733_p3), %s173_s26, 4  ;;  %s174_s30 = scalar_lea.sflag (!%p733_p3), [#allocation3], %s173_s26 }
  0x23   : > { %s177_s4 = scalar_lea.vmem (!%p733_p3), [#allocation2], %s512_s27 }
  0x26   : > { %658 = dma.done.wait (%p756_p11), %s174_s30, 256  }
  0x27   : > { %660 = vsyncadd (%p756_p11), %s174_s30, 4294967040 }
  0x28   : > { %662 = dma.done.wait (%p39_p1), [#allocation5], 384  }
  0x29   : > { %664 = vsyncadd (%p39_p1), [#allocation5], 4294966912  ;;  %v217_v0 = vld [vmem:[%s177_s4] sm:$0xff]  ;;  %s684_s20 = smov 127   ;;  %s685_s5 = smov 1   ;;  %v218_v1 = vld [vmem:[%s177_s4 + $0x8] sm:$0xff]  ;;  %v219_v3 = vlaneseq }
  0x2a   : > { %239 = vrot.lane.b32.xlu1 %v217_v0, %s684_s20  ;;  %224 = vrot.lane.b32.xlu0 %v217_v0, %s685_s5  ;;  %v253_v2 = vld [vmem:[#allocation4 + $0x8] sm:$0xff]  ;;  %vm255_vm0 = vcmask 64512   ;;  %v252_v14 = vld [vmem:[#allocation4] sm:$0xff]  ;;  %v254_v15 = vld [vmem:[#allocation4 + $0x10] sm:$0xff]  ;;  %p209_p1 = scmp.lt.s32.totalorder %s728_s19, 3  ;;  %vm390_vm5 = vcmask 7168  }
  0x2b   : > { %274 = vmatpush.msra.mxu0 %v217_v0  ;;  %294 = vmatpush.msra.mxu1 %v218_v1  ;;  %v220_v6 = vand.u32 127, %v219_v3 }
  0x2c   : > { %516 = vmatmul.msk.f32.vlgmr.msra.gmra.mxu0 %vm255_vm0, %v253_v2  ;;  %517 = vmatmul.msk.f32.vlgmr.msra.gmra.mxu1 %vm255_vm0, %v253_v2  ;;  %s830_s19 = smov (!%p209_p1, %s728_s19), 3 }
  0x2d   : > { %v221_v7 = vadd.s32 128, %v220_v6  ;;  %vm228_vm1 = vcmp.lt.s32.totalorder %v220_v6, 1  ;;  %vm243_vm2 = vcmp.lt.s32.totalorder %v220_v6, 127  ;;  %vm222_vm3 = vcmp.gt.s32.totalorder %v220_v6, 0  ;;  %s514_s29 = sshll.u32 %s830_s19, 3 }
  0x2e   : > { %s212_s8 = scalar_lea.vmem %s820_s2, %s514_s29  ;;  %s216_s11 = scalar_lea.vmem %s821_s3, %s514_s29 }
  0x2f   : > { %vm238_vm4 = vcmp.lt.s32.totalorder %v221_v7, 255 }
  0x32   : > { %241 = vrot.lane.b32.xlu1 %v218_v1, %s684_s20  ;;  %226 = vrot.lane.b32.xlu0 %v218_v1, %s685_s5 }
  0x9c   : > { %v240_v4 = vpop.permute.xlu1 %239  ;;  %v225_v5 = vpop.permute.xlu0 %224 }
  0xa4   : > { %v242_v8 = vpop.permute.xlu1 %241  ;;  %v227_v9 = vpop.permute.xlu0 %226 }
  0xa5   : > { %v230_v10 = vsel %vm228_vm1, %v227_v9, %v225_v5  ;;  %v229_v11 = vsel %vm228_vm1, %v225_v5, %v227_v9  ;;  %v244_v12 = vsel %vm243_vm2, %v240_v4, %v242_v8  ;;  %v245_v13 = vsel %vm243_vm2, %v242_v8, %v240_v4 }
  0xa6   : > { %518 = vmatpush.msk.msra.mxu2 %vm222_vm3, %v230_v10  ;;  %337 = vmatpush.msra.mxu3 %v229_v11 }
  0xa7   : > { %360 = vmatpush.msrb.mxu0 %v244_v12  ;;  %522 = vmatpush.msk.msrb.mxu1 %vm238_vm4, %v245_v13 }
  0xa8   : > { %519 = vmatmul.msk.f32.vlgmr.msra.gmra.mxu2 %vm255_vm0, %v252_v14  ;;  %520 = vmatmul.msk.f32.vlgmr.msra.gmra.mxu3 %vm255_vm0, %v252_v14 }
  0xa9   : > { %521 = vmatmul.msk.f32.vlgmr.msrb.gmra.mxu0 %vm255_vm0, %v254_v15  ;;  %523 = vmatmul.msk.f32.vlgmr.msrb.gmra.mxu1 %vm255_vm0, %v254_v15  ;;  %v276_v16 = vpop.f32.mrf.mxu0  ;;  %v296_v17 = vpop.f32.mrf.mxu1 }
 0x126   : > { %v362_v18 = vpop.f32.mrf.mxu0  ;;  %v382_v19 = vpop.f32.mrf.mxu1 }
 0x12b   : > { %v319_v20 = vpop.f32.mrf.mxu2  ;;  %v339_v21 = vpop.f32.mrf.mxu3 }
 0x12c   : > { %v320_v22 = vadd.f32 %v319_v20, %v276_v16  ;;  %v340_v23 = vadd.f32 %v339_v21, %v296_v17 }
 0x12e   : > { %v385_v24 = vadd.f32 %v362_v18, %v320_v22  ;;  %v386_v25 = vadd.f32 %v382_v19, %v340_v23 }
 0x130   : > { %v387_v26 = vadd.f32 %v386_v25, %v385_v24  ;;  %v392_v27 = vmul.f32 %v385_v24, %v385_v24  ;;  %v393_v28 = vmul.f32 %v386_v25, %v386_v25 }
 0x132   : > { %388 = vadd.xlane.f32.xlu2 %v387_v26  ;;  %v394_v29 = vadd.f32 %v393_v28, %v392_v27 }
 0x13a   : > { %395 = vadd.xlane.f32.xlu2 %v394_v29 }
 0x1a5   : > { %v389_v30 = vpop.xlane.xlu2 %388 }
 0x1a6   : > { %391 = vst.msk [vmem:[%s212_s8] sm:$0xff] %vm390_vm5, %v389_v30 }
 0x1ad   : > { %v396_v31 = vpop.xlane.xlu2 %395 }
 0x1ae   : > { %397 = vst.msk [vmem:[%s216_s11] sm:$0xff] %vm390_vm5, %v396_v31 }
 0x1af PF: > { %p15_p3 = scmp.ge.s32.totalorder %s742_s25, 6   ;;  %s825_s12 = smov %s671_s13 }
 0x1b0   : > { %s826_s13 = smov %s675_s14  ;;  %s827_s14 = smov %s752_s28 }
 0x1b1   : > { %s828_s15 = smov %s742_s25  ;;  %17 = sbr.rel (!%p15_p3) target bundleno = 4 (0x4), region = 84 }
 0x1b6   :  { %431 = vsyncpa [#allocation3], 1 }
 0x1b7   :  { %433 = vsyncpa [#allocation3 + $0x1], 1 }
 0x1b8   :  { %434 = vsyncpa [#allocation5], 1 }

// kernel: basic_block_1d.5
= control target key start
LH: loop header
LB: loop body
LE: loop exit
PB: predicated region body
PF: predicated region fallthrough
CT: control target
= control target key end

     0   :  { %12 = vsyncpa [#allocation3], 0  ;;  %s1070_s0 = inlined_call_operand.vmem [shape: f32[4,8,256], index: 0, kind: input, shape index: {}]   ;;  %s1071_s1 = inlined_call_operand.vmem [shape: f32[3,8,8], index: 1, kind: input, shape index: {}]   ;;  %s1072_s2 = inlined_call_operand.vmem [shape: f32[8,1], index: 2, kind: input, shape index: {}]   ;;  %s1073_s3 = inlined_call_operand.vmem [shape: f32[8,1], index: 3, kind: input, shape index: {}]   ;;  %s1074_s4 = inlined_call_operand.vmem [shape: f32[3,8,8], index: 4, kind: input, shape index: {}]   ;;  %s1075_s5 = inlined_call_operand.vmem [shape: f32[8,1], index: 5, kind: input, shape index: {}]   ;;  %s1076_s6 = inlined_call_operand.vmem [shape: f32[8,1], index: 6, kind: input, shape index: {}]   ;;  %s1077_s7 = inlined_call_operand.hbm [shape: f32[4,8,256], index: 7, kind: output, shape index: {}]  }
   0x1   :  { %14 = vsyncpa [#allocation3 + $0x1], 0  ;;  %s895_s24 = smov 0   ;;  %s897_s25 = smov 0  }
   0x2   :  { %s899_s26 = smov 0   ;;  %s901_s27 = smov 0  }
   0x3 LB: > { %s916_s28 = sadd.s32 4294967295, %s850_s27   ;;  %s713_s29 = sadd.s32 4294967294, %s850_s27   ;;  %s850_s27 = sphi %s901_s27, %s1083_s27   ;;  %s846_s26 = sphi %s899_s26, %s1082_s26   ;;  %s842_s25 = sphi %s897_s25, %s1081_s25   ;;  %s838_s24 = sphi %s895_s24, %s1080_s24  }
   0x4   : > { %s920_s30 = sadd.s32 1, %s850_s27   ;;  %s179_s8 = sadd.s32 1, %s846_s26 }
   0x5   : > { %s176_s9 = ssub.s32 %s850_s27, %s920_s30  ;;  %p189_p0 = scmp.ne.s32.totalorder %s846_s26, %s842_s25 }
   0x6   : > { %p177_p1 = scmp.eq.s32.totalorder %s176_s9, 0  ;;  %p190_p2 = scmp.eq.s32.totalorder %s916_s28, 3 }
   0x7   : > { %p195_p3 = scmp.ne.s32.totalorder %s842_s25, %s838_s24  ;;  %p196_p4 = scmp.eq.s32.totalorder %s713_s29, 3 }
   0x8   : > { %s931_s10 = scalar_select %p177_p1, %s846_s26, %s179_s8  }
   0x9   : > { %p933_p5 = por %p190_p2, %p189_p0  ;;  %p937_p6 = por %p196_p4, %p195_p3 }
   0xa   : > { %p716_p7 = scmp.ge.s32.totalorder %s850_s27, 1  ;;  %p240_p8 = scmp.lt.s32.totalorder %s850_s27, 5 }
   0xc   : > { %p241_p9 = pnand %p716_p7, %p240_p8 }
   0xd   : > { %p272_p10 = scmp.lt.s32.totalorder (!%p241_p9), %s916_s28, 3  ;;  %s852_s18 = smov (!%p241_p9), 127  }
   0xe   : > { %244 = sbr.rel (%p241_p9) target bundleno = 560 (0x230), region = 48  ;;  %s853_s19 = smov (!%p241_p9), 1  }
   0xf   : > { %s269_s9 = sand.u32 (!%p241_p9), 1, %s842_s25   ;;  %s808_s8 = scalar_lea.hbm (!%p241_p9), %s1077_s7, 64 }
  0x13   : > { %s273_s13 = scalar_select %p272_p10, %s916_s28, 3  ;;  %v313_v2 = vld [vmem:[%s1071_s1 + $0x8] sm:$0xff]  ;;  %vm315_vm0 = vcmask 64512   ;;  %v447_v3 = vld [vmem:[%s1072_s2] sm:$0xff]  ;;  %v854_v4 = vmov 0   ;;  %v279_v6 = vlaneseq  ;;  %v314_v18 = vld [vmem:[%s1071_s1 + $0x10] sm:$0xff] }
  0x14   : > { %785 = vset.pattern.permute.xlu2 %v854_v4  ;;  %786 = vset.pattern.permute.xlu1 %v854_v4  ;;  %v455_v5 = vld [vmem:[%s1073_s3] sm:$0xff]  ;;  %v482_v38 = vld [vmem:[%s1074_s4 + $0x8] sm:$0xff]  ;;  %v483_v42 = vld [vmem:[%s1074_s4 + $0x10] sm:$0xff] }
  0x15   : > { %s741_s14 = sshll.u32 %s273_s13, 4  ;;  %450 = vperm.xlu2 %785, %v447_v3   ;;  %787 = vset.pattern.permute.xlu0 %v854_v4  ;;  %v973_v9 = vand.u32 127, %v279_v6  ;;  %v312_v17 = vld [vmem:[%s1071_s1] sm:$0xff]  ;;  %s717_s13 = sshll.u32 %s269_s9, 4 }
  0x16   : > { %s276_s17 = scalar_lea.vmem %s1070_s0, %s741_s14  ;;  %v623_v37 = vld [vmem:[%s1076_s6] sm:$0xff]  ;;  %s742_s14 = sshll.u32 %s916_s28, 4 }
  0x17   : > { %v948_v0 = vld [vmem:[%s276_s17] sm:$0xff]  ;;  %v954_v1 = vld [vmem:[%s276_s17 + $0x8] sm:$0xff]  ;;  %v281_v10 = vadd.s32 128, %v973_v9  ;;  %vm288_vm1 = vcmp.lt.s32.totalorder %v973_v9, 1  ;;  %vm303_vm2 = vcmp.lt.s32.totalorder %v973_v9, 127  ;;  %vm282_vm3 = vcmp.gt.s32.totalorder %v973_v9, 0  ;;  %s649_s17 = scalar_lea.hbm %s1077_s7, %s742_s14 }
  0x18   : > { %299 = vrot.lane.b32.xlu1 %v948_v0, %s852_s18  ;;  %284 = vrot.lane.b32.xlu0 %v948_v0, %s853_s19  ;;  %v615_v39 = vld [vmem:[%s1075_s5] sm:$0xff]  ;;  %s271_s20 = scalar_lea.vmem [#allocation2], %s717_s13  ;;  %s653_s22 = sshll.u32 %s649_s17, 4  ;;  %s654_s22 = int_to_ptr.hbm [resolvable:$true] %s653_s22 }
  0x19   : > { %334 = vmatpush.msra.mxu0 %v948_v0  ;;  %354 = vmatpush.msra.mxu1 %v954_v1  ;;  %vm298_vm4 = vcmp.lt.s32.totalorder %v281_v10, 255  ;;  %v481_v47 = vld [vmem:[%s1074_s4] sm:$0xff]  ;;  %s651_s21 = sshll.u32 %s271_s20, 4  ;;  %s638_s28 = scalar_lea.sflag [#allocation3], %s269_s9  ;;  %s652_s21 = int_to_ptr.vmem [resolvable:$true] %s651_s21 }
  0x1a   : > { %720 = vmatmul.msk.f32.vlgmr.msra.gmra.mxu0 %vm315_vm0, %v313_v2  ;;  %721 = vmatmul.msk.f32.vlgmr.msra.gmra.mxu1 %vm315_vm0, %v313_v2  ;;  %s802_s23 = sshra.s32 %s654_s22, 4  ;;  %s803_s23 = int_to_ptr.hbm [resolvable:$true] %s802_s23 }
  0x1b   : > { %p809_p0 = scmp.lt.s32.totalorder %s803_s23, %s1077_s7 }
  0x1d   : > { %458 = vperm.xlu2 %785, %v455_v5  }
  0x20   : > { %301 = vrot.lane.b32.xlu1 %v954_v1, %s852_s18  ;;  %286 = vrot.lane.b32.xlu0 %v954_v1, %s853_s19 }
  0x6f   : > { %v451_v21 = vpop.permute.xlu2 %450 }
  0x77   : > { %v459_v32 = vpop.permute.xlu2 %458 }
  0x8a   : > { %v300_v7 = vpop.permute.xlu1 %299  ;;  %v285_v8 = vpop.permute.xlu0 %284 }
  0x92   : > { %v302_v11 = vpop.permute.xlu1 %301  ;;  %v287_v12 = vpop.permute.xlu0 %286 }
  0x93   : > { %v290_v13 = vsel %vm288_vm1, %v287_v12, %v285_v8  ;;  %v289_v14 = vsel %vm288_vm1, %v285_v8, %v287_v12  ;;  %v304_v15 = vsel %vm303_vm2, %v300_v7, %v302_v11  ;;  %v305_v16 = vsel %vm303_vm2, %v302_v11, %v300_v7 }
  0x94   : > { %722 = vmatpush.msk.msra.mxu2 %vm282_vm3, %v290_v13  ;;  %397 = vmatpush.msra.mxu3 %v289_v14 }
  0x95   : > { %420 = vmatpush.msrb.mxu0 %v304_v15  ;;  %726 = vmatpush.msk.msrb.mxu1 %vm298_vm4, %v305_v16 }
  0x96   : > { %723 = vmatmul.msk.f32.vlgmr.msra.gmra.mxu2 %vm315_vm0, %v312_v17  ;;  %724 = vmatmul.msk.f32.vlgmr.msra.gmra.mxu3 %vm315_vm0, %v312_v17 }
  0x97   : > { %725 = vmatmul.msk.f32.vlgmr.msrb.gmra.mxu0 %vm315_vm0, %v314_v18  ;;  %727 = vmatmul.msk.f32.vlgmr.msrb.gmra.mxu1 %vm315_vm0, %v314_v18  ;;  %v336_v19 = vpop.f32.mrf.mxu0  ;;  %v356_v20 = vpop.f32.mrf.mxu1 }
 0x114   : > { %v422_v22 = vpop.f32.mrf.mxu0  ;;  %v442_v23 = vpop.f32.mrf.mxu1 }
 0x119   : > { %v379_v24 = vpop.f32.mrf.mxu2  ;;  %v399_v25 = vpop.f32.mrf.mxu3 }
 0x11a   : > { %v380_v26 = vadd.f32 %v379_v24, %v336_v19  ;;  %v400_v27 = vadd.f32 %v399_v25, %v356_v20 }
 0x11c   : > { %v445_v28 = vadd.f32 %v422_v22, %v380_v26  ;;  %v446_v29 = vadd.f32 %v442_v23, %v400_v27 }
 0x11e   : > { %v453_v30 = vmul.f32 %v451_v21, %v445_v28  ;;  %v454_v31 = vmul.f32 %v451_v21, %v446_v29 }
 0x120   : > { %v462_v33 = vadd.f32 %v459_v32, %v454_v31  ;;  %v461_v34 = vadd.f32 %v459_v32, %v453_v30 }
 0x122   : > { %v464_v35 = vmax.f32 %v462_v33, 0.0  ;;  %v463_v36 = vmax.f32 %v461_v34, 0.0 }
 0x124   : > { %475 = vrot.lane.b32.xlu1 %v464_v35, %s852_s18  ;;  %522 = vmatpush.msrb.mxu3 %v464_v35 }
 0x125   : > { %465 = vrot.lane.b32.xlu2 %v463_v36, %s853_s19  ;;  %473 = vrot.lane.b32.xlu0 %v463_v36, %s852_s18  ;;  %s804_s18 = scalar_lea.hbm %s803_s23, 16 }
 0x126   : > { %502 = vmatpush.msrb.mxu2 %v463_v36  ;;  %729 = vmatmul.msk.f32.vlgmr.msrb.gmra.mxu3 %vm315_vm0, %v482_v38  ;;  %p805_p11 = scmp.ne.s32.totalorder %s803_s23, %s804_s18  ;;  %p810_p1 = scmp.lt.s32.totalorder %s808_s8, %s804_s18 }
 0x127   : > { %728 = vmatmul.msk.f32.vlgmr.msrb.gmra.mxu2 %vm315_vm0, %v482_v38 }
 0x128   : > { %p806_p12 = pnand %p805_p11, %p933_p5  ;;  %p811_p2 = por %p810_p1, %p809_p0 }
 0x12a   : > { %p807_p13 = pneg %p806_p12 }
 0x12c   : > { %618 = vperm.xlu1 %786, %v615_v39   ;;  %p812_p3 = pnand %p811_p2, %p807_p13 }
 0x12d   : > { %626 = vperm.xlu2 %785, %v623_v37   ;;  %467 = vrot.lane.b32.xlu0 %v464_v35, %s853_s19 }
 0x17f   : > { %v466_v45 = vpop.permute.xlu2 %465 }
 0x187   : > { %v627_v63 = vpop.permute.xlu2 %626 }
 0x196   : > { %v476_v40 = vpop.permute.xlu1 %475 }
 0x197   : > { %v474_v41 = vpop.permute.xlu0 %473 }
 0x198   : > { %v477_v43 = vsel %vm303_vm2, %v474_v41, %v476_v40  ;;  %v478_v44 = vsel %vm303_vm2, %v476_v40, %v474_v41 }
 0x199   : > { %588 = vmatpush.msra.mxu2 %v477_v43  ;;  %734 = vmatpush.msk.msra.mxu3 %vm298_vm4, %v478_v44 }
 0x19a   : > { %733 = vmatmul.msk.f32.vlgmr.msra.gmra.mxu2 %vm315_vm0, %v483_v42  ;;  %735 = vmatmul.msk.f32.vlgmr.msra.gmra.mxu3 %vm315_vm0, %v483_v42 }
 0x19e   : > { %v619_v58 = vpop.permute.xlu1 %618 }
 0x19f   : > { %v468_v46 = vpop.permute.xlu0 %467 }
 0x1a0   : > { %v469_v48 = vsel %vm288_vm1, %v466_v45, %v468_v46  ;;  %v470_v49 = vsel %vm288_vm1, %v468_v46, %v466_v45 }
 0x1a1   : > { %730 = vmatpush.msk.msra.mxu0 %vm282_vm3, %v470_v49  ;;  %565 = vmatpush.msra.mxu1 %v469_v48 }
 0x1a2   : > { %731 = vmatmul.msk.f32.vlgmr.msra.gmra.mxu0 %vm315_vm0, %v481_v47  ;;  %732 = vmatmul.msk.f32.vlgmr.msra.gmra.mxu1 %vm315_vm0, %v481_v47 }
 0x1a9   : > { %v524_v51 = vpop.f32.mrf.mxu3 }
 0x1aa   : > { %v504_v50 = vpop.f32.mrf.mxu2 }
 0x21d   : > { %v590_v52 = vpop.f32.mrf.mxu2  ;;  %v610_v53 = vpop.f32.mrf.mxu3 }
 0x21f   : > { %v547_v54 = vpop.f32.mrf.mxu0  ;;  %v567_v55 = vpop.f32.mrf.mxu1 }
 0x220   : > { %v548_v56 = vadd.f32 %v547_v54, %v504_v50  ;;  %v568_v57 = vadd.f32 %v567_v55, %v524_v51 }
 0x222   : > { %v613_v59 = vadd.f32 %v590_v52, %v548_v56  ;;  %v614_v60 = vadd.f32 %v610_v53, %v568_v57 }
 0x224   : > { %v621_v61 = vmul.f32 %v619_v58, %v613_v59  ;;  %v622_v62 = vmul.f32 %v619_v58, %v614_v60 }
 0x226   : > { %v629_v2 = vadd.f32 %v627_v63, %v621_v61  ;;  %v630_v3 = vadd.f32 %v627_v63, %v622_v62 }
 0x228   : > { %v631_v4 = vadd.f32 %v629_v2, %v948_v0  ;;  %v632_v5 = vadd.f32 %v630_v3, %v954_v1 }
 0x22a   : > { %v633_v6 = vmax.f32 %v631_v4, 0.0  ;;  %v634_v7 = vmax.f32 %v632_v5, 0.0 }
 0x22c   : > { %635 = vst [vmem:[%s271_s20] sm:$0xff] %v633_v6 }
 0x22d   : > { %636 = vst [vmem:[%s271_s20 + $0x8] sm:$0xff] %v634_v7 }
 0x22e   : > { %815 = shalt.err (!%p812_p3)
}
 0x22f   : > { %743 = dma.vmem_to_hbm [thread:$0]  (%p933_p5), %s652_s21, 256, %s654_s22, %s638_s28  }
 0x230 PF: > { %p749_p4 = scmp.ge.s32.totalorder %s850_s27, 2  ;;  %s665_s9 = sand.u32 1, %s838_s24  }
 0x231   : > { %s666_s15 = scalar_lea.sflag [#allocation3], %s665_s9 }
 0x232   : > { %p746_p7 = pnand %p749_p4, %p937_p6 }
 0x234   : > { %p747_p8 = pneg %p746_p7 }
 0x236   : > { %833 = dma.done.wait (%p747_p8), %s666_s15, 256  }
 0x237   : > { %835 = vsyncadd (%p747_p8), %s666_s15, 4294967040  ;;  %p17_p9 = scmp.ge.s32.totalorder %s920_s30, 6   ;;  %s1080_s24 = smov %s842_s25 }
 0x238   : > { %s1081_s25 = smov %s846_s26  ;;  %s1082_s26 = smov %s931_s10 }
 0x239   : > { %s1083_s27 = smov %s920_s30  ;;  %19 = sbr.rel (!%p17_p9) target bundleno = 3 (0x3), region = 83 }
 0x23e   :  { %672 = vsyncpa [#allocation3], 1 }
 0x23f   :  { %674 = vsyncpa [#allocation3 + $0x1], 1 }

</bundles_post_ra>
